<compile_context>
chip_gen: v5e
topology: v5e:2x2
jax: 0.10.0
libtpu: 0.0.40
codegen_flags: <defaults>
</compile_context>

<pallas_src>
import functools

import jax
import jax.numpy as jnp
from jax import lax
from jax.experimental import pallas as pl
from jax.experimental.pallas import tpu as pltpu


def _round_up(n, m):
    return ((n + m - 1) // m) * m


def _bf16_eup_available():
    # bf16 tanh on the EUP is a win on v6e / v7x; v5e (and older) lack bf16 EUP/VPU.
    try:
        kind = jax.devices()[0].device_kind.lower()
    except Exception:
        return False
    return ("v6" in kind) or ("v7" in kind)


def _critic_kernel(x_ref,
                   w1_ref, b1_ref,
                   w2_ref, b2_ref,
                   w3_ref, b3_ref,
                   w4_ref, b4_ref,
                   out_ref,
                   *, low_precision_tanh):
    # x_ref: (BT, state_dim) f32, streamed in the caller's original row-major layout.
    # Weights are (out, in) in the compute dtype; biases are (out, 1) f32; b4 scalar SMEM.
    cdt = w1_ref.dtype
    mm = functools.partial(jnp.dot, preferred_element_type=jnp.float32)

    def act(h_f32):
        # v6e/v7x: tanh in bf16 (2x EUP throughput, no separate f32->bf16 cast).
        # v5e / f32 path: f32 tanh, then cast to the MXU input dtype.
        if low_precision_tanh:
            return jnp.tanh(h_f32.astype(cdt))
        return jnp.tanh(h_f32).astype(cdt)

    # Layer 1 performs the layout change for free: contract both minor dims ("NT" matmul),
    # w1 (64, sd) x x (BT, sd) -> (64, BT) with the batch riding the 128 lanes.
    x = x_ref[...].astype(cdt)
    h = lax.dot_general(w1_ref[...], x,
                        dimension_numbers=(((1,), (1,)), ((), ())),
                        preferred_element_type=jnp.float32) + b1_ref[...]
    h = act(h)                                           # (64, BT)

    h = act(mm(w2_ref[...], h) + b2_ref[...])            # (32, BT)
    h = act(mm(w3_ref[...], h) + b3_ref[...])            # (8,  BT)
    h = mm(w4_ref[...], h) + b4_ref[0]                   # (1,  BT); b4 scalar from SMEM

    out_ref[...] = h.astype(out_ref.dtype)


def critic_forward(x, params, *, b_tile=2048, compute_dtype=jnp.bfloat16,
                   low_precision_tanh=None):
    """x: (B, state_dim) float32.  Returns (B, 1) float32."""
    B, state_dim = x.shape

    if low_precision_tanh is None:
        low_precision_tanh = (compute_dtype == jnp.bfloat16) and _bf16_eup_available()

    # Batch tile: big enough to amortize per-grid-step overhead, capped at ceil(B/2)
    # (rounded up to 128 lanes) so v7x's two TensorCores each get at least one tile.
    bt = max(128, min(_round_up(b_tile, 128), _round_up(pl.cdiv(B, 2), 128)))
    if B < bt:
        bt = B                      # tiny batch: one full-array block
    n_tiles = pl.cdiv(B, bt)        # boundary tile may be partial (bounded reads, masked stores)

    w = [params[f"w{i}"].astype(compute_dtype) for i in range(1, 5)]   # (out, in)
    b = [params[f"b{i}"].astype(jnp.float32) for i in range(1, 4)]     # (out, 1)
    b4 = params["b4"].reshape((1,)).astype(jnp.float32)                # scalar -> SMEM

    # Weights / biases: full-extent blocks with constant index_maps -> VMEM-resident
    # across all grid steps.
    resident = lambda a: pl.BlockSpec(a.shape, lambda i: (0, 0))

    kernel = functools.partial(_critic_kernel, low_precision_tanh=low_precision_tanh)

    out = pl.pallas_call(
        kernel,
        out_shape=jax.ShapeDtypeStruct((1, B), jnp.float32),
        grid=(n_tiles,),
        in_specs=[
            # Streamed x tile in the original row-major f32 layout (no wrapper pre-pass).
            pl.BlockSpec((bt, state_dim), lambda i: (i, 0)),
            resident(w[0]), resident(b[0]),
            resident(w[1]), resident(b[1]),
            resident(w[2]), resident(b[2]),
            resident(w[3]),
            pl.BlockSpec(memory_space=pltpu.MemorySpace.SMEM),   # b4 scalar
        ],
        out_specs=pl.BlockSpec((1, bt), lambda i: (0, i)),       # lane-dense output slab
        compiler_params=pltpu.CompilerParams(
            dimension_semantics=("parallel",),   # shard batch tiles across TCs (v7x)
        ),
    )(x, w[0], b[0], w[1], b[1], w[2], b[2], w[3], b4)

    return out.reshape(B, 1)


def init_critic_params(key, state_dim):
    """Orthogonal weights with tanh gain (5/3), zero biases — mirrors PyTorch init_.
    Weights stored (out_features, in_features); biases stored (out_features, 1)."""
    gain = 5.0 / 3.0  # torch.nn.init.calculate_gain('tanh')
    sizes = [(64, state_dim), (32, 64), (8, 32), (1, 8)]
    ortho = jax.nn.initializers.orthogonal(scale=gain)
    keys = jax.random.split(key, len(sizes))
    params = {}
    for i, ((fan_out, fan_in), k) in enumerate(zip(sizes, keys), start=1):
        params[f"w{i}"] = ortho(k, (fan_out, fan_in), jnp.float32)
        params[f"b{i}"] = jnp.zeros((fan_out, 1), jnp.float32)
    return params


def critic_reference(x, params):
    h = x
    for i in range(1, 5):
        h = h @ params[f"w{i}"].T + params[f"b{i}"].reshape(1, -1)
        if i < 4:
            h = jnp.tanh(h)
    return h


if __name__ == "__main__":
    key = jax.random.PRNGKey(0)
    k_param, k_x1, k_x2 = jax.random.split(key, 3)

    state_dim = 32
    params = init_critic_params(k_param, state_dim)

    # Small single-block batch, and a batch that exercises the multi-tile "parallel"
    # grid plus a partial boundary tile (300 = 256 + 44 with bt=256).
    x_small = jax.random.normal(k_x1, (8, state_dim), dtype=jnp.float32)
    x_big = jax.random.normal(k_x2, (300, state_dim), dtype=jnp.float32)

    for x in (x_small, x_big):
        ref = critic_reference(x, params)

        # f32 MXU-input path: tight semantic check (validation only, not the default).
        out_f32 = jax.block_until_ready(
            critic_forward(x, params, compute_dtype=jnp.float32))
        assert out_f32.shape == (x.shape[0], 1)
        assert jnp.allclose(out_f32, ref, atol=5e-3, rtol=5e-3)

        # Default bf16-MXU / f32-accumulate path: looser tolerance vs f32 reference.
        out_bf16 = jax.block_until_ready(critic_forward(x, params))
        assert out_bf16.shape == (x.shape[0], 1)
        assert jnp.allclose(out_bf16, ref, atol=1e-1, rtol=1e-1)

    print("KERNEL_OK")
</pallas_src>

<mosaic_0001>
module attributes {stable_mosaic.version = 11 : i64} {
  func.func @_critic_kernel(%arg0: i32, %arg1: memref<8x32xf32, #tpu.memory_space<vmem>>, %arg2: memref<64x32xf32, #tpu.memory_space<vmem>>, %arg3: memref<64x1xf32, #tpu.memory_space<vmem>>, %arg4: memref<32x64xf32, #tpu.memory_space<vmem>>, %arg5: memref<32x1xf32, #tpu.memory_space<vmem>>, %arg6: memref<8x32xf32, #tpu.memory_space<vmem>>, %arg7: memref<8x1xf32, #tpu.memory_space<vmem>>, %arg8: memref<1x8xf32, #tpu.memory_space<vmem>>, %arg9: memref<1xf32, #tpu.memory_space<smem>>, %arg10: memref<1x8xf32, #tpu.memory_space<vmem>>) attributes {dimension_semantics = [#tpu.dimension_semantics<parallel>], iteration_bounds = array<i64: 1>, scalar_prefetch = 0 : i64, scratch_operands = 0 : i64, tpu.core_type = #tpu.core_type<tc>, window_params = [{transform_indices = @transform_0, window_bounds = array<i64: 8, 32>}, {pipeline_mode = #tpu.pipeline_mode<synchronous>, transform_indices = @transform_1, window_bounds = array<i64: 64, 32>}, {pipeline_mode = #tpu.pipeline_mode<synchronous>, transform_indices = @transform_2, window_bounds = array<i64: 64, 1>}, {pipeline_mode = #tpu.pipeline_mode<synchronous>, transform_indices = @transform_3, window_bounds = array<i64: 32, 64>}, {pipeline_mode = #tpu.pipeline_mode<synchronous>, transform_indices = @transform_4, window_bounds = array<i64: 32, 1>}, {pipeline_mode = #tpu.pipeline_mode<synchronous>, transform_indices = @transform_5, window_bounds = array<i64: 8, 32>}, {pipeline_mode = #tpu.pipeline_mode<synchronous>, transform_indices = @transform_6, window_bounds = array<i64: 8, 1>}, {pipeline_mode = #tpu.pipeline_mode<synchronous>, transform_indices = @transform_7, window_bounds = array<i64: 1, 8>}, {transform_indices = @transform_8, window_bounds = array<i64: 1>}, {transform_indices = @transform_9, window_bounds = array<i64: 1, 8>}]} {
    %c0 = arith.constant 0 : index
    %c0_0 = arith.constant 0 : index
    %0 = vector.load %arg1[%c0, %c0_0] : memref<8x32xf32, #tpu.memory_space<vmem>>, vector<8x32xf32>
    %c0_1 = arith.constant 0 : index
    %c0_2 = arith.constant 0 : index
    %1 = vector.load %arg2[%c0_1, %c0_2] : memref<64x32xf32, #tpu.memory_space<vmem>>, vector<64x32xf32>
    %cst = arith.constant dense<0.000000e+00> : vector<64x8xf32>
    %2 = tpu.matmul %1, %0, %cst {dimension_numbers = #tpu.dot_dimension_numbers<[1], [1], [0], [0], [0, 0, 1, 0], [], []>} : vector<64x32xf32>, vector<8x32xf32>, vector<64x8xf32> -> vector<64x8xf32>
    %c0_3 = arith.constant 0 : index
    %c0_4 = arith.constant 0 : index
    %3 = vector.load %arg3[%c0_3, %c0_4] : memref<64x1xf32, #tpu.memory_space<vmem>>, vector<64x1xf32>
    %4 = vector.broadcast %3 : vector<64x1xf32> to vector<64x8xf32>
    %5 = arith.addf %2, %4 : vector<64x8xf32>
    %6 = math.tanh %5 : vector<64x8xf32>
    %c0_5 = arith.constant 0 : index
    %c0_6 = arith.constant 0 : index
    %7 = vector.load %arg4[%c0_5, %c0_6] : memref<32x64xf32, #tpu.memory_space<vmem>>, vector<32x64xf32>
    %cst_7 = arith.constant dense<0.000000e+00> : vector<32x8xf32>
    %8 = tpu.matmul %7, %6, %cst_7 {dimension_numbers = #tpu.dot_dimension_numbers<[1], [0], [0], [1], [0, 0, 1, 1], [], []>} : vector<32x64xf32>, vector<64x8xf32>, vector<32x8xf32> -> vector<32x8xf32>
    %c0_8 = arith.constant 0 : index
    %c0_9 = arith.constant 0 : index
    %9 = vector.load %arg5[%c0_8, %c0_9] : memref<32x1xf32, #tpu.memory_space<vmem>>, vector<32x1xf32>
    %10 = vector.broadcast %9 : vector<32x1xf32> to vector<32x8xf32>
    %11 = arith.addf %8, %10 : vector<32x8xf32>
    %12 = math.tanh %11 : vector<32x8xf32>
    %c0_10 = arith.constant 0 : index
    %c0_11 = arith.constant 0 : index
    %13 = vector.load %arg6[%c0_10, %c0_11] : memref<8x32xf32, #tpu.memory_space<vmem>>, vector<8x32xf32>
    %cst_12 = arith.constant dense<0.000000e+00> : vector<8x8xf32>
    %14 = tpu.matmul %13, %12, %cst_12 {dimension_numbers = #tpu.dot_dimension_numbers<[1], [0], [0], [1], [0, 0, 1, 1], [], []>} : vector<8x32xf32>, vector<32x8xf32>, vector<8x8xf32> -> vector<8x8xf32>
    %c0_13 = arith.constant 0 : index
    %c0_14 = arith.constant 0 : index
    %15 = vector.load %arg7[%c0_13, %c0_14] : memref<8x1xf32, #tpu.memory_space<vmem>>, vector<8x1xf32>
    %16 = vector.broadcast %15 : vector<8x1xf32> to vector<8x8xf32>
    %17 = arith.addf %14, %16 : vector<8x8xf32>
    %18 = math.tanh %17 : vector<8x8xf32>
    %c0_15 = arith.constant 0 : index
    %c0_16 = arith.constant 0 : index
    %19 = vector.load %arg8[%c0_15, %c0_16] : memref<1x8xf32, #tpu.memory_space<vmem>>, vector<1x8xf32>
    %cst_17 = arith.constant dense<0.000000e+00> : vector<1x8xf32>
    %20 = tpu.matmul %19, %18, %cst_17 {dimension_numbers = #tpu.dot_dimension_numbers<[1], [0], [0], [1], [0, 0, 1, 1], [], []>} : vector<1x8xf32>, vector<8x8xf32>, vector<1x8xf32> -> vector<1x8xf32>
    %c0_18 = arith.constant 0 : index
    %21 = memref.load %arg9[%c0_18] : memref<1xf32, #tpu.memory_space<smem>>
    %22 = vector.broadcast %21 : f32 to vector<1x8xf32>
    %23 = arith.addf %20, %22 : vector<1x8xf32>
    %c0_19 = arith.constant 0 : index
    %c0_20 = arith.constant 0 : index
    %24 = vector.load %arg10[%c0_19, %c0_20] : memref<1x8xf32, #tpu.memory_space<vmem>>, vector<1x8xf32>
    tpu.vector_store %arg10[%c0_19, %c0_20], %23 {strides = array<i32>} : memref<1x8xf32, #tpu.memory_space<vmem>>, vector<1x8xf32>,
    return
  }
  func.func @transform_0(%arg0: i32) -> (i32, i32) {
    %c0_i32 = arith.constant 0 : i32
    %c0_i32_0 = arith.constant 0 : i32
    return %arg0, %c0_i32 : i32, i32
  }
  func.func @transform_1(%arg0: i32) -> (i32, i32) {
    %c0_i32 = arith.constant 0 : i32
    %c0_i32_0 = arith.constant 0 : i32
    %c0_i32_1 = arith.constant 0 : i32
    return %c0_i32, %c0_i32_0 : i32, i32
  }
  func.func @transform_2(%arg0: i32) -> (i32, i32) {
    %c0_i32 = arith.constant 0 : i32
    %c0_i32_0 = arith.constant 0 : i32
    %c0_i32_1 = arith.constant 0 : i32
    return %c0_i32, %c0_i32_0 : i32, i32
  }
  func.func @transform_3(%arg0: i32) -> (i32, i32) {
    %c0_i32 = arith.constant 0 : i32
    %c0_i32_0 = arith.constant 0 : i32
    %c0_i32_1 = arith.constant 0 : i32
    return %c0_i32, %c0_i32_0 : i32, i32
  }
  func.func @transform_4(%arg0: i32) -> (i32, i32) {
    %c0_i32 = arith.constant 0 : i32
    %c0_i32_0 = arith.constant 0 : i32
    %c0_i32_1 = arith.constant 0 : i32
    return %c0_i32, %c0_i32_0 : i32, i32
  }
  func.func @transform_5(%arg0: i32) -> (i32, i32) {
    %c0_i32 = arith.constant 0 : i32
    %c0_i32_0 = arith.constant 0 : i32
    %c0_i32_1 = arith.constant 0 : i32
    return %c0_i32, %c0_i32_0 : i32, i32
  }
  func.func @transform_6(%arg0: i32) -> (i32, i32) {
    %c0_i32 = arith.constant 0 : i32
    %c0_i32_0 = arith.constant 0 : i32
    %c0_i32_1 = arith.constant 0 : i32
    return %c0_i32, %c0_i32_0 : i32, i32
  }
  func.func @transform_7(%arg0: i32) -> (i32, i32) {
    %c0_i32 = arith.constant 0 : i32
    %c0_i32_0 = arith.constant 0 : i32
    %c0_i32_1 = arith.constant 0 : i32
    return %c0_i32, %c0_i32_0 : i32, i32
  }
  func.func @transform_8(%arg0: i32) -> i32 {
    %c0_i32 = arith.constant 0 : i32
    %c0_i32_0 = arith.constant 0 : i32
    return %c0_i32 : i32
  }
  func.func @transform_9(%arg0: i32) -> (i32, i32) {
    %c0_i32 = arith.constant 0 : i32
    %c0_i32_0 = arith.constant 0 : i32
    return %c0_i32, %arg0 : i32, i32
  }
}

</mosaic_0001>

<bundles_post_ra>
// kernel: tpu_custom_call.1
= control target key start
LH: loop header
LB: loop body
LE: loop exit
PB: predicated region body
PF: predicated region fallthrough
CT: control target
= control target key end

     0   :  { %vm91_vm0 = vcmask 261120   ;;  %v399_v3 = vmov 0   ;;  %s552_s0 = inlined_call_operand.vmem [shape: f32[8,32], index: 0, kind: input, shape index: {}]   ;;  %s553_s1 = inlined_call_operand.vmem [shape: f32[64,32], index: 1, kind: input, shape index: {}]   ;;  %s554_s2 = inlined_call_operand.vmem [shape: f32[64,1], index: 2, kind: input, shape index: {}]   ;;  %s555_s3 = inlined_call_operand.vmem [shape: f32[32,64], index: 3, kind: input, shape index: {}]   ;;  %s556_s4 = inlined_call_operand.vmem [shape: f32[32,1], index: 4, kind: input, shape index: {}]   ;;  %s557_s5 = inlined_call_operand.vmem [shape: f32[8,32], index: 5, kind: input, shape index: {}]   ;;  %s558_s6 = inlined_call_operand.vmem [shape: f32[8,1], index: 6, kind: input, shape index: {}]   ;;  %s559_s7 = inlined_call_operand.vmem [shape: f32[1,8], index: 7, kind: input, shape index: {}]   ;;  %s560_s8 = inlined_call_operand.<no memory space> [shape: f32[1], index: 8, kind: input, shape index: {}]   ;;  %s561_s9 = inlined_call_operand.hbm [shape: f32[1,8], index: 9, kind: output, shape index: {}]  }
   0x1   :  { %v34_v0 = vld [vmem:[%s552_s0] sm:$0xff]  ;;  %v50_v1 = vld [vmem:[%s554_s2 + $0x38] sm:$0xff]  ;;  %344 = vset.pattern.permute.xlu0 %v399_v3  ;;  %v48_v4 = vld [vmem:[%s554_s2 + $0x28] sm:$0xff]  ;;  %345 = vset.pattern.permute.xlu1 %v399_v3 }
   0x2   :  { %333 = vmatpush.xpose.msk.msra.mxu3 %vm91_vm0, %v34_v0  ;;  %v39_v2 = vld [vmem:[%s553_s1 + $0x20] sm:$0xff]  ;;  %88 = vperm.xlu0 %344, %v50_v1   ;;  %v46_v6 = vld [vmem:[%s554_s2 + $0x18] sm:$0xff]  ;;  %v49_v7 = vld [vmem:[%s554_s2 + $0x30] sm:$0xff] }
   0x3   :  { %318 = vmatpush.xpose.msk.msra.mxu0 %vm91_vm0, %v34_v0  ;;  %v35_v5 = vld [vmem:[%s553_s1] sm:$0xff]  ;;  %346 = vset.pattern.permute.xlu2 %v399_v3 }
   0x4   :  { %78 = vperm.xlu1 %345, %v48_v4   ;;  %68 = vperm.xlu2 %346, %v46_v6  }
   0x5   :  { %323 = vmatmul.msk.f32.vlgmr.msra.gmra.mxu3 %vm91_vm0, %v39_v2 }
   0x6   :  { %319 = vmatmul.msk.f32.vlgmr.msra.gmra.mxu0 %vm91_vm0, %v35_v5 }
   0x7   :  { %15 = vsyncpa [#allocation4], 0  ;;  %v40_v8 = vld [vmem:[%s553_s1 + $0x28] sm:$0xff]  ;;  %v47_v9 = vld [vmem:[%s554_s2 + $0x20] sm:$0xff]  ;;  %vm196_vm1 = vcmask 523264   ;;  %vm276_vm2 = vcmask 64512  }
   0x8   :  { %v36_v10 = vld [vmem:[%s553_s1 + $0x8] sm:$0xff]  ;;  %v45_v11 = vld [vmem:[%s554_s2 + $0x10] sm:$0xff]  ;;  %v43_v14 = vld [vmem:[%s554_s2] sm:$0xff]  ;;  %vm300_vm3 = vcmask 57344  }
   0x9   :  { %v44_v12 = vld [vmem:[%s554_s2 + $0x8] sm:$0xff]  ;;  %v41_v13 = vld [vmem:[%s553_s1 + $0x30] sm:$0xff]  ;;  %v175_v16 = vld [vmem:[%s556_s4 + $0x18] sm:$0xff]  ;;  %s309_s2 = sshll.u32 %s561_s9, 4  ;;  %s310_s2 = int_to_ptr.hbm [resolvable:$true] %s309_s2 }
   0xa   :  { %83 = vperm.xlu0 %344, %v49_v7   ;;  %v37_v15 = vld [vmem:[%s553_s1 + $0x10] sm:$0xff]  ;;  %v42_v18 = vld [vmem:[%s553_s1 + $0x38] sm:$0xff]  ;;  %v173_v19 = vld [vmem:[%s556_s4 + $0x8] sm:$0xff] }
   0xb   :  { %v174_v17 = vld [vmem:[%s556_s4 + $0x10] sm:$0xff]  ;;  %v38_v20 = vld [vmem:[%s553_s1 + $0x18] sm:$0xff]  ;;  %v172_v21 = vld [vmem:[%s556_s4] sm:$0xff] }
   0xc   :  { %73 = vperm.xlu1 %345, %v47_v9   ;;  %63 = vperm.xlu2 %346, %v45_v11   ;;  %v243_v22 = vld [vmem:[%s558_s6] sm:$0xff]  ;;  %v171_v55 = vld [vmem:[%s555_s3 + $0x18] sm:$0xff]  ;;  %v169_v57 = vld [vmem:[%s555_s3 + $0x8] sm:$0xff] }
   0xd   :  { %324 = vmatmul.msk.f32.gmra.mxu3 %vm91_vm0, %v40_v8  ;;  %v168_v54 = vld [vmem:[%s555_s3] sm:$0xff]  ;;  %v170_v58 = vld [vmem:[%s555_s3 + $0x10] sm:$0xff] }
   0xe   :  { %320 = vmatmul.msk.f32.gmra.mxu0 %vm91_vm0, %v36_v10  ;;  %v242_v10 = vld [vmem:[%s557_s5] sm:$0xff]  ;;  %s400_s5 = smov [#allocation3]  }
   0xf   :  { %s307_s17 = sshll.u32 %s400_s5, 4  ;;  %s308_s17 = int_to_ptr.vmem [resolvable:$true] %s307_s17 }
  0x12   :  { %58 = vperm.xlu0 %344, %v44_v12  }
  0x14   :  { %53 = vperm.xlu1 %345, %v43_v14   ;;  %193 = vperm.xlu2 %346, %v175_v16  }
  0x15   :  { %325 = vmatmul.msk.f32.gmra.mxu3 %vm91_vm0, %v41_v13 }
  0x16   :  { %321 = vmatmul.msk.f32.gmra.mxu0 %vm91_vm0, %v37_v15  ;;  %v273_v15 = vld [vmem:[%s559_s7] sm:$0x1] }
  0x1a   :  { %188 = vperm.xlu0 %344, %v174_v17   ;;  %v275_v17 = vstv %s560_s8 }
  0x1c   :  { %183 = vperm.xlu1 %345, %v173_v19   ;;  %178 = vperm.xlu2 %346, %v172_v21  }
  0x1d   :  { %326 = vmatmul.msk.f32.gmra.mxu3 %vm91_vm0, %v42_v18 }
  0x1e   :  { %322 = vmatmul.msk.f32.gmra.mxu0 %vm91_vm0, %v38_v20 }
  0x22   :  { %246 = vperm.xlu0 %344, %v243_v22  }
  0x5e   :  { %v69_v31 = vpop.permute.xlu2 %68 }
  0x66   :  { %v64_v41 = vpop.permute.xlu2 %63 }
  0x6e   :  { %v194_v60 = vpop.permute.xlu2 %193 }
  0x74   :  { %v89_v27 = vpop.permute.xlu0 %88 }
  0x76   :  { %v79_v28 = vpop.permute.xlu1 %78  ;;  %v179_v6 = vpop.permute.xlu2 %178 }
  0x7c   :  { %v84_v32 = vpop.permute.xlu0 %83 }
  0x7e   :  { %v74_v33 = vpop.permute.xlu1 %73 }
  0x83   :  { %v136_v23 = vpop.f32.mrf.mxu0 }
  0x84   :  { %v59_v44 = vpop.permute.xlu0 %58 }
  0x86   :  { %v54_v45 = vpop.permute.xlu1 %53 }
  0x87   :  { %v137_v49 = vadd.f32 %v136_v23, %v54_v45 }
  0x88   :  { %v148_v24 = vpop.f32.mrf.mxu3 }
  0x89   :  { %v149_v39 = vadd.f32 %v148_v24, %v74_v33 }
  0x8b   :  { %v139_v26 = vpop.f32.mrf.mxu0 }
  0x8c   :  { %v140_v47 = vadd.f32 %v139_v26, %v59_v44  ;;  %v189_v1 = vpop.permute.xlu0 %188 }
  0x8e   :  { %v184_v2 = vpop.permute.xlu1 %183 }
  0x90   :  { %v151_v25 = vpop.f32.mrf.mxu3 }
  0x91   :  { %v152_v37 = vadd.f32 %v151_v25, %v79_v28 }
  0x93   :  { %v142_v30 = vpop.f32.mrf.mxu0 }
  0x94   :  { %v143_v43 = vadd.f32 %v142_v30, %v64_v41  ;;  %v247_v12 = vpop.permute.xlu0 %246 }
  0x98   :  { %v154_v29 = vpop.f32.mrf.mxu3 }
  0x99   :  { %v155_v35 = vadd.f32 %v154_v29, %v84_v32 }
  0x9b   :  { %v145_v38 = vpop.f32.mrf.mxu0 }
  0x9c   :  { %v146_v40 = vadd.f32 %v145_v38, %v69_v31 }
  0xa0   :  { %v157_v34 = vpop.f32.mrf.mxu3 }
  0xa1   :  { %v158_v36 = vadd.f32 %v157_v34, %v89_v27 }
  0xa3   :  { %347 = vtanh.f32 %v158_v36 }
  0xa4   :  { %349 = vtanh.f32 %v155_v35 }
  0xa5   :  { %351 = vtanh.f32 %v152_v37 }
  0xa6   :  { %353 = vtanh.f32 %v149_v39 }
  0xa7   :  { %355 = vtanh.f32 %v146_v40 }
  0xa8   :  { %357 = vtanh.f32 %v143_v43 }
  0xa9   :  { %v348_v42 = vpop.eup %347  ;;  %359 = vtanh.f32 %v140_v47 }
  0xaa   :  { %217 = vmatpush.msra.mxu1 %v348_v42  ;;  %334 = vmatpush.msra.mxu2 %v348_v42  ;;  %v350_v46 = vpop.eup %349  ;;  %361 = vtanh.f32 %v137_v49 }
  0xab   :  { %v352_v48 = vpop.eup %351 }
  0xac   :  { %218 = vmatpush.msra.mxu1 %v350_v46  ;;  %335 = vmatpush.msra.mxu2 %v350_v46  ;;  %v354_v50 = vpop.eup %353 }
  0xad   :  { %v356_v51 = vpop.eup %355 }
  0xae   :  { %219 = vmatpush.msra.mxu1 %v352_v48  ;;  %336 = vmatpush.msra.mxu2 %v352_v48  ;;  %v358_v52 = vpop.eup %357 }
  0xaf   :  { %v360_v53 = vpop.eup %359 }
  0xb0   :  { %220 = vmatpush.msra.mxu1 %v354_v50  ;;  %337 = vmatpush.msra.mxu2 %v354_v50  ;;  %v362_v56 = vpop.eup %361 }
  0xb2   :  { %221 = vmatpush.msra.mxu1 %v356_v51  ;;  %338 = vmatpush.msra.mxu2 %v356_v51 }
  0xb4   :  { %222 = vmatpush.msra.mxu1 %v358_v52  ;;  %339 = vmatpush.msra.mxu2 %v358_v52 }
  0xb6   :  { %223 = vmatpush.msra.mxu1 %v360_v53  ;;  %340 = vmatpush.msra.mxu2 %v360_v53 }
  0xb8   :  { %224 = vmatpush.msra.mxu1 %v362_v56  ;;  %341 = vmatpush.msra.mxu2 %v362_v56 }
  0xb9   :  { %327 = vmatmul.msk.f32.vlgmr.msra.gmra.mxu1 %vm196_vm1, %v168_v54  ;;  %330 = vmatmul.msk.f32.vlgmr.msra.gmra.mxu2 %vm196_vm1, %v171_v55 }
  0xc1   :  { %328 = vmatmul.msk.f32.gmra.mxu1 %vm196_vm1, %v169_v57 }
  0xc9   :  { %329 = vmatmul.msk.f32.gmra.mxu1 %vm196_vm1, %v170_v58 }
 0x136   :  { %v226_v59 = vpop.f32.mrf.mxu1 }
 0x137   :  { %v227_v7 = vadd.f32 %v226_v59, %v179_v6 }
 0x13c   :  { %v235_v61 = vpop.f32.mrf.mxu2 }
 0x13d   :  { %v236_v62 = vadd.f32 %v235_v61, %v194_v60 }
 0x13e   :  { %v229_v63 = vpop.f32.mrf.mxu1 }
 0x13f   :  { %363 = vtanh.f32 %v236_v62  ;;  %v230_v4 = vadd.f32 %v229_v63, %v184_v2 }
 0x145   :  { %v364_v0 = vpop.eup %363 }
 0x146   :  { %v232_v3 = vpop.f32.mrf.mxu1  ;;  %264 = vmatpush.msrb.mxu2 %v364_v0 }
 0x147   :  { %v233_v5 = vadd.f32 %v232_v3, %v189_v1 }
 0x149   :  { %365 = vtanh.f32 %v233_v5 }
 0x14a   :  { %367 = vtanh.f32 %v230_v4 }
 0x14b   :  { %369 = vtanh.f32 %v227_v7 }
 0x14f   :  { %v366_v8 = vpop.eup %365 }
 0x150   :  { %265 = vmatpush.msrb.mxu2 %v366_v8  ;;  %v368_v9 = vpop.eup %367 }
 0x151   :  { %v370_v11 = vpop.eup %369 }
 0x152   :  { %266 = vmatpush.msrb.mxu2 %v368_v9 }
 0x154   :  { %267 = vmatpush.msrb.mxu2 %v370_v11 }
 0x155   :  { %331 = vmatmul.msk.f32.vlgmr.msrb.gmra.mxu2 %vm91_vm0, %v242_v10 }
 0x1d8   :  { %v269_v13 = vpop.f32.mrf.mxu2 }
 0x1d9   :  { %v270_v14 = vadd.f32 %v269_v13, %v247_v12 }
 0x1db   :  { %371 = vtanh.f32 %v270_v14 }
 0x1e1   :  { %v372_v16 = vpop.eup %371 }
 0x1e2   :  { %295 = vmatpush.msra.mxu2 %v372_v16 }
 0x1e3   :  { %332 = vmatmul.msk.f32.vlgmr.msra.gmra.mxu2 %vm276_vm2, %v273_v15 }
 0x266   :  { %v297_v18 = vpop.f32.mrf.mxu2 }
 0x267   :  { %v298_v19 = vadd.f32 %v297_v18, %v275_v17 }
 0x269   :  { %301 = vst.msk [vmem:[#allocation3] sm:$0x1] %vm300_vm3, %v298_v19 }
 0x26a   :  { %312 = dma.vmem_to_hbm [thread:$0]  %s308_s17, 16, %s310_s2, [#allocation4]  }
 0x26b   :  { %397 = dma.done.wait [#allocation4], 16  }
 0x26c   :  { %398 = vsyncadd [#allocation4], 4294967280 }
 0x26d   :  { %317 = vsyncpa [#allocation4], 1 }

</bundles_post_ra>
